<compile_context>
chip_gen: v7x
topology: tpu7x:2x2x1
jax: 0.10.0
libtpu: 0.0.40
codegen_flags: <defaults>
</compile_context>

<pallas_src>
import jax
import jax.numpy as jnp
from jax.experimental import pallas as pl
from jax.experimental.pallas import tpu as pltpu

# Tiling knobs.
_MAX_TILE_K = 2048                 # widest single feature (reduction) tile
_MAX_TILE_M = 4096                 # widest single row tile (output lanes)
_TARGET_X_TILE_BYTES = 4 << 20     # ~4 MiB X tile -> ~8 MiB double-buffered


def _lasso_forward_kernel(x_ref, w_ref, o_ref, acc_ref):
    # x_ref:   (TILE_M, TILE_K) tile of X
    # w_ref:   (1, TILE_K)      tile of W (native PyTorch layout)
    # o_ref:   (1, TILE_M)      lane-dense output row tile
    # acc_ref: (1, TILE_M)      f32 accumulator, resident across the K axis
    k = pl.program_id(1)

    @pl.when(k == 0)
    def _():
        acc_ref[...] = jnp.zeros_like(acc_ref)

    # (1, TK) x (TM, TK) contracted on K -> (1, TM): lane-dense partial result.
    acc_ref[...] += jax.lax.dot_general(
        w_ref[...],
        x_ref[...],
        dimension_numbers=(((1,), (1,)), ((), ())),
        preferred_element_type=jnp.float32,
    )

    @pl.when(k == pl.num_programs(1) - 1)
    def _():
        o_ref[...] = acc_ref[...].astype(o_ref.dtype)


def _round_up(x: int, m: int) -> int:
    return (x + m - 1) // m * m


def _balanced_tile(size: int, max_tile: int, align: int) -> int:
    """Tile <= max_tile (multiple of `align`) minimizing end-of-axis padding."""
    num_blocks = -(-size // max_tile)          # ceil
    return _round_up(-(-size // num_blocks), align)


@jax.jit
def lasso_forward(x: jax.Array, w: jax.Array) -> jax.Array:
    """Compute X @ W^T (bias-free nn.Linear) with a Pallas TPU kernel.

    x: (N, D) float32
    w: (1, D) float32  (PyTorch nn.Linear weight layout, kept as-is)
    returns: (N, 1) float32
    """
    n, d = x.shape
    assert w.shape == (1, d), f"expected weight shape (1, {d}), got {w.shape}"

    # --- choose tiles (shapes are static under jit: all Python ints) -------
    if d <= _MAX_TILE_K:
        # Single K block spanning the full feature dim: no feature padding,
        # no accumulator carry needed beyond a single grid step.
        tile_k, d_pad = d, d
    else:
        tile_k = _balanced_tile(d, _MAX_TILE_K, 128)
        d_pad = _round_up(d, tile_k)

    # Row tile: target ~4 MiB X blocks; multiple of 128 when M is tiled so the
    # lane-dense (1, tile_m) output block stays layout-legal.
    m_cap = min(
        _MAX_TILE_M,
        max(128, (_TARGET_X_TILE_BYTES // (tile_k * x.dtype.itemsize)) // 128 * 128),
    )
    if n <= m_cap:
        tile_m = _round_up(n, 8)   # single M block: only sublane alignment needed
        n_pad = tile_m
    else:
        tile_m = _balanced_tile(n, m_cap, 128)
        n_pad = _round_up(n, tile_m)

    # --- pad only when strictly necessary (zeros are inert in the reduce) --
    if (n_pad, d_pad) != (n, d):
        x = jnp.pad(x, ((0, n_pad - n), (0, d_pad - d)))
    if d_pad != d:
        w = jnp.pad(w, ((0, 0), (0, d_pad - d)))

    grid = (n_pad // tile_m, d_pad // tile_k)

    out_row = pl.pallas_call(
        _lasso_forward_kernel,
        out_shape=jax.ShapeDtypeStruct((1, n_pad), jnp.float32),
        grid_spec=pltpu.PrefetchScalarGridSpec(
            num_scalar_prefetch=0,
            grid=grid,
            in_specs=[
                pl.BlockSpec((tile_m, tile_k), lambda i, k: (i, k)),
                pl.BlockSpec((1, tile_k), lambda i, k: (0, k)),
            ],
            out_specs=pl.BlockSpec((1, tile_m), lambda i, k: (0, i)),
            scratch_shapes=[pltpu.VMEM((1, tile_m), jnp.float32)],
        ),
        compiler_params=pltpu.CompilerParams(
            # Batch axis parallel (megacore-shardable); K is the reduction
            # with a resident accumulator, so it is last and arbitrary.
            dimension_semantics=("parallel", "arbitrary"),
        ),
    )(x, w)

    return out_row[0, :n].reshape(n, 1)


if __name__ == "__main__":
    # Small shapes consistent with the module: (batch, input_size).
    batch = 16
    input_size = 32

    key = jax.random.PRNGKey(0)
    kx, kw = jax.random.split(key)
    X = jax.random.normal(kx, (batch, input_size), dtype=jnp.float32)
    # nn.Linear(input_size, 1, bias=False) weight layout: (1, input_size).
    W = jax.random.normal(kw, (1, input_size), dtype=jnp.float32) * 0.1

    out = lasso_forward(X, W)
    out = jax.block_until_ready(out)

    # Reference: same semantics as torch nn.Linear(bias=False).
    ref = X @ W.T
    assert out.shape == (batch, 1)
    assert jnp.allclose(out, ref, atol=1e-5, rtol=1e-5)

    # TODO(synk): fit/evaluate/CustLoss are training-time utilities (SGD loop,
    # L1 penalty, distance-weighted MSE) and are out of scope for forward().

    print("KERNEL_OK")
</pallas_src>

<mosaic_0001>
module attributes {stable_mosaic.version = 11 : i64} {
  func.func @_lasso_forward_kernel(%arg0: i32, %arg1: i32, %arg2: memref<16x32xf32, #tpu.memory_space<vmem>>, %arg3: memref<1x32xf32, #tpu.memory_space<vmem>>, %arg4: memref<1x16xf32, #tpu.memory_space<vmem>>, %arg5: memref<1x16xf32, #tpu.memory_space<vmem>>) attributes {dimension_semantics = [#tpu.dimension_semantics<parallel>, #tpu.dimension_semantics<arbitrary>], iteration_bounds = array<i64: 1, 1>, scalar_prefetch = 0 : i64, scratch_operands = 1 : i64, tpu.core_type = #tpu.core_type<tc>, window_params = [{transform_indices = @transform_0, window_bounds = array<i64: 16, 32>}, {transform_indices = @transform_1, window_bounds = array<i64: 1, 32>}, {transform_indices = @transform_2, window_bounds = array<i64: 1, 16>}]} {
    %c0_i32 = arith.constant 0 : i32
    %0 = arith.cmpi eq, %arg1, %c0_i32 : i32
    %1 = arith.extui %0 : i1 to i32
    %c0_i32_0 = arith.constant 0 : i32
    %2 = arith.cmpi ne, %1, %c0_i32_0 : i32
    scf.if %2 {
      %cst_10 = arith.constant 0.000000e+00 : f32
      %12 = vector.broadcast %cst_10 : f32 to vector<1x16xf32>
      %c0_11 = arith.constant 0 : index
      %c0_12 = arith.constant 0 : index
      %13 = vector.load %arg5[%c0_11, %c0_12] : memref<1x16xf32, #tpu.memory_space<vmem>>, vector<1x16xf32>
      tpu.vector_store %arg5[%c0_11, %c0_12], %12 {strides = array<i32>} : memref<1x16xf32, #tpu.memory_space<vmem>>, vector<1x16xf32>,
    } else {
    }
    %c0 = arith.constant 0 : index
    %c0_1 = arith.constant 0 : index
    %3 = vector.load %arg5[%c0, %c0_1] : memref<1x16xf32, #tpu.memory_space<vmem>>, vector<1x16xf32>
    %c0_2 = arith.constant 0 : index
    %c0_3 = arith.constant 0 : index
    %4 = vector.load %arg3[%c0_2, %c0_3] : memref<1x32xf32, #tpu.memory_space<vmem>>, vector<1x32xf32>
    %c0_4 = arith.constant 0 : index
    %c0_5 = arith.constant 0 : index
    %5 = vector.load %arg2[%c0_4, %c0_5] : memref<16x32xf32, #tpu.memory_space<vmem>>, vector<16x32xf32>
    %cst = arith.constant dense<0.000000e+00> : vector<1x16xf32>
    %6 = tpu.matmul %4, %5, %cst {dimension_numbers = #tpu.dot_dimension_numbers<[1], [1], [0], [0], [0, 0, 1, 0], [], []>} : vector<1x32xf32>, vector<16x32xf32>, vector<1x16xf32> -> vector<1x16xf32>
    %7 = arith.addf %3, %6 : vector<1x16xf32>
    %c0_6 = arith.constant 0 : index
    %c0_7 = arith.constant 0 : index
    %8 = vector.load %arg5[%c0_6, %c0_7] : memref<1x16xf32, #tpu.memory_space<vmem>>, vector<1x16xf32>
    tpu.vector_store %arg5[%c0_6, %c0_7], %7 {strides = array<i32>} : memref<1x16xf32, #tpu.memory_space<vmem>>, vector<1x16xf32>,
    %c0_i32_8 = arith.constant 0 : i32
    %9 = arith.cmpi eq, %arg1, %c0_i32_8 : i32
    %10 = arith.extui %9 : i1 to i32
    %c0_i32_9 = arith.constant 0 : i32
    %11 = arith.cmpi ne, %10, %c0_i32_9 : i32
    scf.if %11 {
      %c0_10 = arith.constant 0 : index
      %c0_11 = arith.constant 0 : index
      %12 = vector.load %arg5[%c0_10, %c0_11] : memref<1x16xf32, #tpu.memory_space<vmem>>, vector<1x16xf32>
      %c0_12 = arith.constant 0 : index
      %c0_13 = arith.constant 0 : index
      %13 = vector.load %arg4[%c0_12, %c0_13] : memref<1x16xf32, #tpu.memory_space<vmem>>, vector<1x16xf32>
      tpu.vector_store %arg4[%c0_12, %c0_13], %12 {strides = array<i32>} : memref<1x16xf32, #tpu.memory_space<vmem>>, vector<1x16xf32>,
    } else {
    }
    return
  }
  func.func @transform_0(%arg0: i32, %arg1: i32) -> (i32, i32) {
    %c0_i32 = arith.constant 0 : i32
    return %arg0, %arg1 : i32, i32
  }
  func.func @transform_1(%arg0: i32, %arg1: i32) -> (i32, i32) {
    %c0_i32 = arith.constant 0 : i32
    %c0_i32_0 = arith.constant 0 : i32
    return %c0_i32, %arg1 : i32, i32
  }
  func.func @transform_2(%arg0: i32, %arg1: i32) -> (i32, i32) {
    %c0_i32 = arith.constant 0 : i32
    %c0_i32_0 = arith.constant 0 : i32
    return %c0_i32, %arg0 : i32, i32
  }
}

</mosaic_0001>

<bundles_post_ra>
// kernel: lasso_forward.1
= control target key start
LH: loop header
LB: loop body
LE: loop exit
PB: predicated region body
PF: predicated region fallthrough
CT: control target
= control target key end

     0   :  { %7 = vsyncpa [#allocation4], 0  ;;  %s263_s0 = inlined_call_operand.hbm [shape: f32[16,32], index: 0, kind: input, shape index: {}]   ;;  %s264_s1 = inlined_call_operand.vmem [shape: f32[1,32], index: 1, kind: input, shape index: {}]   ;;  %s265_s2 = inlined_call_operand.hbm [shape: f32[1,16], index: 2, kind: output, shape index: {}]  }
   0x1   :  { %8 = vsyncpa [#allocation5], 0  ;;  %s211_s9 = smov [#allocation3]   ;;  %s163_s13 = scalar_lea.hbm %s263_s0, 256 }
   0x2   :  { %s14_s10 = sshll.u32 %s211_s9, 4  ;;  %p164_p0 = scmp.ne.s32.totalorder %s263_s0, %s163_s13  ;;  %s15_s10 = int_to_ptr.vmem [resolvable:$true] %s14_s10 }
   0x3   :  { %p167_p1 = scmp.lt.u32.totalorder %s163_s13, %s263_s0 }
   0x5   :  { %p169_p2 = pnand %p167_p1, %p164_p0 }
   0x7   :  { %172 = shalt.err (!%p169_p2)
}
   0x8   :  { %s173_s18 = scalar_lea.vmem %s15_s10, 256  ;;  %p178_p4 = scmp.lt.s32.totalorder %s15_s10, %s15_s10 }
   0x9   :  { %p174_p3 = scmp.ne.s32.totalorder %s15_s10, %s173_s18  ;;  %p179_p5 = scmp.lt.s32.totalorder %s173_s18, %s173_s18 }
   0xb   :  { %p180_p6 = por %p179_p5, %p178_p4 }
   0xd   :  { %p181_p7 = pnand %p180_p6, %p174_p3 }
   0xf   :  { %184 = shalt.err (!%p181_p7)
}
  0x10   :  { %s212_s19 = smov 128   ;;  %s213_s20 = smov 8  }
  0x11   :  { %20 = dma.hbm_to_vmem [thread:$0]  %s263_s0, 256, %s15_s10, [#allocation4], %s212_s19, %s212_s19, %s213_s20  }
  0x12   :  { %207 = dma.done.wait [#allocation4], 256  }
  0x13   :  { %208 = vsyncadd [#allocation4], 4294967040  ;;  %vm30_vm0 = vcmask 122880   ;;  %v214_v0 = vmov 0.0|0.0   ;;  %v215_v1 = vmov 0.0   ;;  %vm216_vm1 = vmmov 0  }
  0x14   :  { %152 = vmatprep.subr.bf16.mxu0 %v214_v0  ;;  %31 = vst.msk [vmem:[#allocation2] sm:$0x1] %vm30_vm0, %v215_v1  ;;  %149 = vmatprep.mubr.msk.f32.mxu0 %vm216_vm1, %v215_v1  ;;  %vm36_vm2 = vcmask 261120   ;;  %v34_v2 = vld [vmem:[#allocation3] sm:$0xff]  ;;  %v35_v3 = vld [vmem:[#allocation3 + $0x8] sm:$0xff]  ;;  %s217_s0 = smov [#allocation6]  }
  0x15   :  { %vm154_vm3 = vmpackc.low %vm36_vm2, %vm36_vm2  ;;  %v153_v4 = vpack.c.bf16 %v35_v3, %v34_v2  ;;  %v33_v5 = vld [vmem:[%s264_s1] sm:$0x1]  ;;  %s130_s25 = sshll.u32 %s217_s0, 4  ;;  %s131_s25 = int_to_ptr.vmem [resolvable:$true] %s130_s25 }
  0x16   :  { %s185_s26 = scalar_lea.vmem %s131_s25, 16  ;;  %s189_s27 = scalar_lea.vmem %s131_s25, 32 }
  0x17   :  { %155 = vmatpush3.bf16.xpose.msk.msra.mxu0 %vm154_vm3, %v153_v4  ;;  %p186_p8 = scmp.ne.s32.totalorder %s131_s25, %s185_s26  ;;  %p190_p9 = scmp.lt.s32.totalorder %s131_s25, %s131_s25 }
  0x18   :  { %p191_p10 = scmp.lt.s32.totalorder %s189_s27, %s185_s26 }
  0x1a   :  { %p192_p11 = por %p191_p10, %p190_p9 }
  0x1b   :  { %v32_v6 = vld [vmem:[#allocation2] sm:$0x1] }
  0x1c   :  { %p193_p12 = pnand %p192_p11, %p186_p8 }
  0x1e   :  { %150 = vmatmul.mubr.msk.f32.vlgmr.msra.gmra.mrb[0].mxu0 %vm36_vm2, %v33_v5 }
  0xf1   :  { %v112_v7 = vpop.f32.mrb[0].mxu0 }
  0xf2   :  { %v116_v8 = vadd.f32 %v112_v7, %v32_v6  ;;  %v151_v9 = vpop.f32.mrb[1].mxu0 }
  0xf4   :  { %118 = vst.msk [vmem:[#allocation2] sm:$0x1] %vm30_vm0, %v116_v8 }
  0xfb   :  { %v122_v10 = vld [vmem:[#allocation2] sm:$0x1] }
  0xfc   :  { %123 = vst.msk [vmem:[#allocation6] sm:$0x1] %vm30_vm0, %v122_v10 }
  0xfd   :  { %196 = shalt.err (!%p193_p12)
}
  0xfe   :  { %s197_s29 = scalar_lea.hbm %s265_s2, 16 }
  0xff   :  { %p198_p13 = scmp.ne.s32.totalorder %s265_s2, %s197_s29  ;;  %p201_p0 = scmp.lt.u32.totalorder %s197_s29, %s265_s2 }
 0x101   :  { %p203_p1 = pnand %p201_p0, %p198_p13 }
 0x103   :  { %206 = shalt.err (!%p203_p1)
}
 0x104   :  { %133 = dma.vmem_to_hbm [thread:$0]  %s131_s25, 16, %s265_s2, [#allocation5]  }
 0x105   :  { %209 = dma.done.wait [#allocation5], 16  }
 0x106   :  { %210 = vsyncadd [#allocation5], 4294967280 }
 0x107   :  { %137 = vsyncpa [#allocation4], 1 }
 0x108   :  { %138 = vsyncpa [#allocation5], 1 }

</bundles_post_ra>
